<compile_context>
chip_gen: v5e
topology: v5e:2x2
jax: 0.10.0
libtpu: 0.0.40
codegen_flags: <defaults>
</compile_context>

<pallas_src>
import functools
import numpy as np
import jax
import jax.numpy as jnp
from jax.experimental import pallas as pl
from jax.experimental.pallas import tpu as pltpu


def _round_up(v, m):
    return ((v + m - 1) // m) * m


# ----------------------------------------------------------------------------
# Pallas kernels
# ----------------------------------------------------------------------------

def _mm_cf_kernel(w_ref, x_ref, b_ref, g_ref, be_ref, o_ref, *, slope, do_ln, eps):
    """out = epilogue(W @ X + b); W:(Cout,K) bf16, X:(K,tc) bf16, f32 acc on MXU."""
    acc = jnp.dot(w_ref[...], x_ref[...], preferred_element_type=jnp.float32)
    acc = acc + b_ref[...]
    if do_ln:                                    # per-token LayerNorm over Cout
        m = jnp.mean(acc, axis=0, keepdims=True)
        v = jnp.mean((acc - m) ** 2, axis=0, keepdims=True)
        acc = (acc - m) * jax.lax.rsqrt(v + eps) * g_ref[...] + be_ref[...]
    if slope is not None:                        # fused LeakyReLU
        acc = jnp.where(acc >= 0.0, acc, slope * acc)
    o_ref[...] = acc


def matmul_cf(w, x, bias=None, slope=None, ln=None, eps=1e-5, tcol=512):
    """Channel-first GEMM: (Cout, M) = W(Cout, K) @ X(K, M).

    bf16 operands, f32 accumulation, full-K block (no K padding / K loop /
    per-k stores), grid over the lane-dense M axis (marked "parallel" so v7x
    can shard it over both TensorCores), optional fused epilogue.
    """
    Cout, K = w.shape
    K2, M = x.shape
    assert K == K2
    if M <= tcol:
        tc, Mp = M, M                            # full block (legal: full-dim)
    else:
        tc = next((t for t in (tcol, 256, 128) if M % t == 0), None)
        if tc is None:
            tc, Mp = 128, _round_up(M, 128)
        else:
            Mp = M
    xp = x if Mp == M else jnp.pad(x, ((0, 0), (0, Mp - M)))
    w16 = w.astype(jnp.bfloat16)
    x16 = xp.astype(jnp.bfloat16)
    b = jnp.zeros((Cout,), jnp.float32) if bias is None else bias
    b = b.reshape(Cout, 1).astype(jnp.float32)
    if ln is not None:
        g = ln[0].reshape(Cout, 1).astype(jnp.float32)
        be = ln[1].reshape(Cout, 1).astype(jnp.float32)
    else:
        g = jnp.ones((Cout, 1), jnp.float32)
        be = jnp.zeros((Cout, 1), jnp.float32)
    out = pl.pallas_call(
        functools.partial(_mm_cf_kernel, slope=slope, do_ln=ln is not None, eps=eps),
        out_shape=jax.ShapeDtypeStruct((Cout, Mp), jnp.float32),
        grid=(Mp // tc,),
        in_specs=[pl.BlockSpec((Cout, K), lambda i: (0, 0)),
                  pl.BlockSpec((K, tc), lambda i: (0, i)),
                  pl.BlockSpec((Cout, 1), lambda i: (0, 0)),
                  pl.BlockSpec((Cout, 1), lambda i: (0, 0)),
                  pl.BlockSpec((Cout, 1), lambda i: (0, 0))],
        out_specs=pl.BlockSpec((Cout, tc), lambda i: (0, i)),
        compiler_params=pltpu.CompilerParams(dimension_semantics=("parallel",)),
    )(w16, x16, b, g, be)
    return out if Mp == M else out[:, :M]


def _in_lrelu_kernel(x_ref, o_ref, *, eps, slope):
    x = x_ref[...]
    m = jnp.mean(x, axis=1, keepdims=True)
    v = jnp.mean((x - m) ** 2, axis=1, keepdims=True)
    y = (x - m) * jax.lax.rsqrt(v + eps)
    o_ref[...] = jnp.where(y >= 0.0, y, slope * y)


def instnorm_lrelu_cf(x, eps=1e-5, slope=0.01):
    """InstanceNorm3d(affine=False) + LeakyReLU over a (C, N, D, H, W) tensor."""
    C, N = x.shape[0], x.shape[1]
    S = int(np.prod(x.shape[2:]))
    R = C * N
    x2 = x.reshape(R, S).astype(jnp.float32)
    rb = 8 if R % 8 == 0 else R
    # TODO(synk): for very large volumes (S too big for a row block) this needs a
    # two-pass (stats then normalize) tiling over the spatial axis.
    out = pl.pallas_call(
        functools.partial(_in_lrelu_kernel, eps=eps, slope=slope),
        out_shape=jax.ShapeDtypeStruct((R, S), jnp.float32),
        grid=(R // rb,),
        in_specs=[pl.BlockSpec((rb, S), lambda i: (i, 0))],
        out_specs=pl.BlockSpec((rb, S), lambda i: (i, 0)),
        compiler_params=pltpu.CompilerParams(dimension_semantics=("parallel",)),
    )(x2)
    return out.reshape(x.shape)


def _ln_cf_kernel(x_ref, g_ref, b_ref, o_ref, *, eps):
    x = x_ref[...]
    m = jnp.mean(x, axis=0, keepdims=True)
    v = jnp.mean((x - m) ** 2, axis=0, keepdims=True)
    o_ref[...] = (x - m) * jax.lax.rsqrt(v + eps) * g_ref[...] + b_ref[...]


def layernorm_cf(x, gamma, beta, eps=1e-5):
    """LayerNorm over the channel (first) axis of a (C, T) array; tokens on lanes."""
    C, T = x.shape
    g = gamma.reshape(C, 1).astype(jnp.float32)
    b = beta.reshape(C, 1).astype(jnp.float32)
    tc = T if T <= 512 else next((t for t in (512, 256, 128) if T % t == 0), T)
    return pl.pallas_call(
        functools.partial(_ln_cf_kernel, eps=eps),
        out_shape=jax.ShapeDtypeStruct((C, T), jnp.float32),
        grid=(T // tc,),
        in_specs=[pl.BlockSpec((C, tc), lambda i: (0, i)),
                  pl.BlockSpec((C, 1), lambda i: (0, 0)),
                  pl.BlockSpec((C, 1), lambda i: (0, 0))],
        out_specs=pl.BlockSpec((C, tc), lambda i: (0, i)),
        compiler_params=pltpu.CompilerParams(dimension_semantics=("parallel",)),
    )(x.astype(jnp.float32), g, b)


def _featloss_kernel(a_ref, b_ref, o_ref, acc_ref, *, inv_total):
    i = pl.program_id(0)

    @pl.when(i == 0)
    def _():
        acc_ref[0] = 0.0

    a = a_ref[...]
    b = b_ref[...]
    ma = jnp.mean(a, axis=1, keepdims=True)
    mb = jnp.mean(b, axis=1, keepdims=True)
    acc_ref[0] += jnp.sum(jnp.abs(a - b - ma + mb))

    @pl.when(i == pl.num_programs(0) - 1)
    def _():
        o_ref[0, 0] = acc_ref[0] * inv_total


def feat_loss_cf(f1, f2):
    """mean(|f1 - f2 - mean_spatial(f1) + mean_spatial(f2)|) on (C, N, D, H, W)."""
    C, N = f1.shape[0], f1.shape[1]
    S = int(np.prod(f1.shape[2:]))
    R = C * N
    a = f1.reshape(R, S).astype(jnp.float32)
    b = f2.reshape(R, S).astype(jnp.float32)
    rb = 8 if R % 8 == 0 else R
    out = pl.pallas_call(
        functools.partial(_featloss_kernel, inv_total=1.0 / (R * S)),
        out_shape=jax.ShapeDtypeStruct((1, 1), jnp.float32),
        grid=(R // rb,),
        in_specs=[pl.BlockSpec((rb, S), lambda i: (i, 0)),
                  pl.BlockSpec((rb, S), lambda i: (i, 0))],
        out_specs=pl.BlockSpec(memory_space=pltpu.MemorySpace.SMEM),
        scratch_shapes=[pltpu.SMEM((1,), jnp.float32)],
    )(a, b)
    return out[0, 0]


# ----------------------------------------------------------------------------
# Conv / pooling built on top of the Pallas GEMM (channel-first layout)
# ----------------------------------------------------------------------------

def _im2col_cf(x, k, stride, pad):
    C, N, D, H, W = x.shape
    xp = jnp.pad(x, ((0, 0), (0, 0), (pad, pad), (pad, pad), (pad, pad)))
    Do = (D + 2 * pad - k) // stride + 1
    Ho = (H + 2 * pad - k) // stride + 1
    Wo = (W + 2 * pad - k) // stride + 1
    taps = []
    for kd in range(k):
        for kh in range(k):
            for kw in range(k):
                taps.append(xp[:, :,
                               kd:kd + stride * Do:stride,
                               kh:kh + stride * Ho:stride,
                               kw:kw + stride * Wo:stride])
    col = jnp.stack(taps, axis=1)                # (C, k^3, N, Do, Ho, Wo)
    return col.reshape(C * k ** 3, N * Do * Ho * Wo), (N, Do, Ho, Wo)


def conv3d_cf(x, w, b=None, stride=1, pad=1, slope=None):
    """Conv3d on a (Cin, N, D, H, W) tensor, PyTorch weight (Cout, Cin, k, k, k)."""
    # TODO(synk): im2col still materializes the K-blown-up matrix in HBM; a fully
    # fused halo-DMA conv kernel would cut HBM reads by ~k^3.
    Cout, Cin, k = w.shape[0], w.shape[1], w.shape[2]
    col, (N, Do, Ho, Wo) = _im2col_cf(x, k, stride, pad)
    y = matmul_cf(w.reshape(Cout, Cin * k ** 3), col, bias=b, slope=slope)
    return y.reshape(Cout, N, Do, Ho, Wo)


def conv3d_relu_cf(x, w):
    """Conv3dReLU(use_batchnorm=False): conv(no bias) -> InstanceNorm3d -> LeakyReLU(0.01)."""
    y = conv3d_cf(x, w, b=None, stride=1, pad=w.shape[2] // 2)
    return instnorm_lrelu_cf(y, eps=1e-5, slope=0.01)


def vm_convblock_cf(x, w, b):
    """voxelmorph ConvBlock: Conv3d(k=3,s=1,p=1,bias) + LeakyReLU(0.2), fully fused."""
    return conv3d_cf(x, w, b=b, stride=1, pad=1, slope=0.2)


def avg_pool3_cf(x):
    """AvgPool3d(kernel=3, stride=2, padding=1), count_include_pad=True."""
    s = jax.lax.reduce_window(x, 0.0, jax.lax.add,
                              window_dimensions=(1, 1, 3, 3, 3),
                              window_strides=(1, 1, 2, 2, 2),
                              padding=((0, 0), (0, 0), (1, 1), (1, 1), (1, 1)))
    return s / 27.0


def max_pool2_cf(x):
    C, N, D, H, W = x.shape
    return x.reshape(C, N, D // 2, 2, H // 2, 2, W // 2, 2).max(axis=(3, 5, 7))


def upsample_nearest2_cf(x):
    for ax in (2, 3, 4):
        x = jnp.repeat(x, 2, axis=ax)
    return x


def upsample_trilinear2_cf(x):
    # nn.Upsample(scale_factor=2, mode='trilinear', align_corners=False)
    C, N, D, H, W = x.shape
    return jax.image.resize(x, (C, N, 2 * D, 2 * H, 2 * W), method='trilinear')


# ----------------------------------------------------------------------------
# Composite module pieces (all in (C, N, D, H, W) layout)
# ----------------------------------------------------------------------------

def unet_forward(x, p):
    """voxelmorph Unet, nb_features=[[16,16],[16,16,16,16]], nb_conv_per_level=1."""
    hist = [x]
    h = x
    for lvl in range(2):                         # encoder
        h = vm_convblock_cf(h, p['enc'][lvl]['w'], p['enc'][lvl]['b'])
        hist.append(h)
        h = max_pool2_cf(h)
    for lvl in range(2):                         # decoder (half_res=False)
        h = vm_convblock_cf(h, p['dec'][lvl]['w'], p['dec'][lvl]['b'])
        h = upsample_nearest2_cf(h)
        h = jnp.concatenate([h, hist.pop()], axis=0)
    for lvl in range(2):                         # remaining convs
        h = vm_convblock_cf(h, p['rem'][lvl]['w'], p['rem'][lvl]['b'])
    return h                                     # (16, N, D, H, W)


def decoder_block_cf(x, skip, p):
    """DecoderBlock: trilinear up x2, concat skip, two Conv3dReLU."""
    x = upsample_trilinear2_cf(x)
    if skip is not None:
        x = jnp.concatenate([x, skip], axis=0)
    x = conv3d_relu_cf(x, p['conv1'])
    x = conv3d_relu_cf(x, p['conv2'])
    return x


def patch_embed_cf(x, p, patch=4):
    """PatchEmbed: 4^3 conv (stride 4) + patch_norm fused into one GEMM epilogue."""
    C, N, D, H, W = x.shape
    nd, nh, nw = D // patch, H // patch, W // patch
    xr = x.reshape(C, N, nd, patch, nh, patch, nw, patch)
    xr = xr.transpose(0, 3, 5, 7, 1, 2, 4, 6).reshape(C * patch ** 3,
                                                      N * nd * nh * nw)
    E = p['w'].shape[0]
    tok = matmul_cf(p['w'].reshape(E, C * patch ** 3), xr,
                    bias=p['b'], ln=(p['gamma'], p['beta']))
    return tok, (N, nd, nh, nw)                  # tok: (E, N*nd*nh*nw)


def patch_merging_cf(tok, N, H, W, T, p):
    C = tok.shape[0]
    xv = tok.reshape(C, N, H, W, T)
    parts = [xv[:, :, 0::2, 0::2, 0::2], xv[:, :, 1::2, 0::2, 0::2],
             xv[:, :, 0::2, 1::2, 0::2], xv[:, :, 0::2, 0::2, 1::2],
             xv[:, :, 1::2, 1::2, 0::2], xv[:, :, 0::2, 1::2, 1::2],
             xv[:, :, 1::2, 0::2, 1::2], xv[:, :, 1::2, 1::2, 1::2]]
    xc = jnp.concatenate(parts, axis=0).reshape(8 * C, -1)
    y = layernorm_cf(xc, p['gamma'], p['beta'])
    return matmul_cf(p['w_red'], y)              # Linear(8C -> 2C), no bias


def vmamba_block_cf(x, p):
    """VMambaBlock backbone producing pyramid features in (C, N, D, H, W) layout."""
    tok, (N, H, W, T) = patch_embed_cf(x, p['patch_embed'])
    outs = []
    for i in range(3):
        # TODO(synk): VMambaLayer (Mamba selective-scan SSM) is not defined in the
        # reference source; its token-mixing blocks are treated as identity here.
        x_out = tok
        Hc, Wc, Tc = H, W, T
        if i < 2:
            tok = patch_merging_cf(tok, N, H, W, T, p['merge'][i])
            H, W, T = H // 2, W // 2, T // 2
        C = p['dims'][i]
        xo = layernorm_cf(x_out, p['out_norm'][i]['gamma'], p['out_norm'][i]['beta'])
        outs.append(xo.reshape(C, N, Hc, Wc, Tc))
    return outs


# ----------------------------------------------------------------------------
# Spatial transformer / VecInt (resampling kept in plain JAX, NCDHW)
# ----------------------------------------------------------------------------

def grid_sample_3d(src, coords):
    # TODO(synk): data-dependent trilinear gather stays in plain JAX (no clean Pallas gather).
    N, C, D, H, W = src.shape
    cd, ch, cw = coords[:, 0], coords[:, 1], coords[:, 2]
    d0, h0, w0 = jnp.floor(cd), jnp.floor(ch), jnp.floor(cw)
    fd, fh, fw = cd - d0, ch - h0, cw - w0
    src_flat = src.reshape(N, C, D * H * W)
    out = jnp.zeros((N, C) + cd.shape[1:], jnp.float32)
    for dd in (0, 1):
        for hh in (0, 1):
            for ww in (0, 1):
                idx_d, idx_h, idx_w = d0 + dd, h0 + hh, w0 + ww
                wgt = ((fd if dd else 1.0 - fd) *
                       (fh if hh else 1.0 - fh) *
                       (fw if ww else 1.0 - fw))
                valid = ((idx_d >= 0) & (idx_d <= D - 1) &
                         (idx_h >= 0) & (idx_h <= H - 1) &
                         (idx_w >= 0) & (idx_w <= W - 1)).astype(jnp.float32)
                flat = ((jnp.clip(idx_d, 0, D - 1).astype(jnp.int32) * H +
                         jnp.clip(idx_h, 0, H - 1).astype(jnp.int32)) * W +
                        jnp.clip(idx_w, 0, W - 1).astype(jnp.int32))
                vals = jax.vmap(lambda s, f: jnp.take(s, f, axis=1))(
                    src_flat, flat.reshape(N, -1))
                vals = vals.reshape(N, C, *cd.shape[1:])
                out = out + (wgt * valid)[:, None] * vals
    return out


def spatial_transform(src, flow):
    """SpatialTransformer (align_corners=True, zeros padding, trilinear)."""
    _, _, D, H, W = flow.shape
    gd, gh, gw = jnp.meshgrid(jnp.arange(D), jnp.arange(H), jnp.arange(W),
                              indexing='ij')
    grid = jnp.stack([gd, gh, gw]).astype(jnp.float32)[None]
    return grid_sample_3d(src, grid + flow)


def vec_int(flow, nsteps=7):
    vec = flow * (1.0 / (2 ** nsteps))
    for _ in range(nsteps):
        vec = vec + spatial_transform(vec, vec)
    return vec


# ----------------------------------------------------------------------------
# Parameter construction (deterministic, synthetic)
# ----------------------------------------------------------------------------

def init_params(key, embed_dim=16, reg_head_chan=8, in_feat=16):
    keys = iter(jax.random.split(key, 128))

    def conv_w(ci, co, k=3, scale=None):
        if scale is None:
            scale = 1.0 / np.sqrt(ci * k ** 3)
        return scale * jax.random.normal(next(keys), (co, ci, k, k, k), jnp.float32)

    def conv_wb(ci, co, k=3):
        return {'w': conv_w(ci, co, k), 'b': jnp.zeros((co,), jnp.float32)}

    p = {}
    # voxelmorph Unet feature extractor (nb_features=[[16,16],[16,16,16,16]])
    p['unet'] = {
        'enc': [conv_wb(1, 16), conv_wb(16, 16)],
        'dec': [conv_wb(16, 16), conv_wb(32, 16)],
        'rem': [conv_wb(32, 16), conv_wb(16, 16)],
    }
    C_in = 2 * in_feat                                      # 32
    E = embed_dim
    p['c1'] = conv_w(C_in, E // 2)
    p['c2'] = conv_w(C_in, reg_head_chan)
    # transformer
    dims = [E, 2 * E, 4 * E]
    p['trans'] = {
        'dims': dims,
        'patch_embed': {'w': conv_w(C_in, E, k=4),
                        'b': jnp.zeros((E,), jnp.float32),
                        'gamma': jnp.ones((E,), jnp.float32),
                        'beta': jnp.zeros((E,), jnp.float32)},
        'merge': [{'gamma': jnp.ones((8 * dims[i],), jnp.float32),
                   'beta': jnp.zeros((8 * dims[i],), jnp.float32),
                   # Linear(8C -> 2C) stored channel-first: (2C, 8C)
                   'w_red': 0.02 * jax.random.normal(next(keys),
                                                     (2 * dims[i], 8 * dims[i]),
                                                     jnp.float32)}
                  for i in range(2)],
        'out_norm': [{'gamma': jnp.ones((dims[i],), jnp.float32),
                      'beta': jnp.zeros((dims[i],), jnp.float32)}
                     for i in range(3)],
    }
    # decoder blocks
    p['up1'] = {'conv1': conv_w(4 * E + 2 * E, 2 * E), 'conv2': conv_w(2 * E, 2 * E)}
    p['up2'] = {'conv1': conv_w(2 * E + E, E), 'conv2': conv_w(E, E)}
    p['up3'] = {'conv1': conv_w(E + E // 2, E // 2), 'conv2': conv_w(E // 2, E // 2)}
    p['up4'] = {'conv1': conv_w(E // 2 + reg_head_chan, reg_head_chan),
                'conv2': conv_w(reg_head_chan, reg_head_chan)}
    # registration head: Normal(0, 1e-5) weights, zero bias
    p['reg_head'] = {'w': 1e-5 * jax.random.normal(next(keys),
                                                   (3, reg_head_chan, 3, 3, 3),
                                                   jnp.float32),
                     'b': jnp.zeros((3,), jnp.float32)}
    return p


# ----------------------------------------------------------------------------
# RecVMambaMorphFeat forward
# ----------------------------------------------------------------------------

def rec_vmamba_morph_feat(params, source, target, rec_num=2,
                          return_feature_loss=True):
    N = source.shape[0]
    source_cf = jnp.transpose(source, (1, 0, 2, 3, 4))      # (1, N, D, H, W)
    target_cf = jnp.transpose(target, (1, 0, 2, 3, 4))

    # target features never change across recurrences: compute once, batched
    # together with the first source pass (doubles GEMM M, amortizes overhead).
    both = unet_forward(jnp.concatenate([source_cf, target_cf], axis=1),
                        params['unet'])
    source_feat, target_feat = both[:, :N], both[:, N:]

    moved = source
    flow = None
    disp_comp = None
    for rr in range(rec_num):
        if rr > 0:
            moved_cf = jnp.transpose(moved, (1, 0, 2, 3, 4))
            source_feat = unet_forward(moved_cf, params['unet'])
        x = jnp.concatenate([source_feat, target_feat], axis=0)  # (32, N, D, H, W)
        # conv skips
        x_s0 = x
        x_s1 = avg_pool3_cf(x)
        f4 = conv3d_relu_cf(x_s1, params['c1'])
        f5 = conv3d_relu_cf(x_s0, params['c2'])
        # transformer pyramid
        out_feats = vmamba_block_cf(x, params['trans'])
        f1, f2 = out_feats[-2], out_feats[-3]
        # decoder
        y = decoder_block_cf(out_feats[-1], f1, params['up1'])
        y = decoder_block_cf(y, f2, params['up2'])
        y = decoder_block_cf(y, f4, params['up3'])
        y = decoder_block_cf(y, f5, params['up4'])
        # registration head (bias fused into the GEMM epilogue)
        flow_cf = conv3d_cf(y, params['reg_head']['w'], b=params['reg_head']['b'],
                            stride=1, pad=1)
        flow = jnp.transpose(flow_cf, (1, 0, 2, 3, 4))       # (N, 3, D, H, W)
        pos_flow = vec_int(flow, nsteps=7)
        if rr == 0:
            disp_comp = pos_flow
        else:
            disp_comp = spatial_transform(disp_comp, pos_flow) + pos_flow
        moved = spatial_transform(source, disp_comp)

    ret = {'moved_vol': moved, 'preint_flow': flow, 'pos_flow': disp_comp}
    if return_feature_loss:
        ret['feature_loss'] = feat_loss_cf(avg_pool3_cf(source_feat),
                                           avg_pool3_cf(target_feat))
    # TODO(synk): return_feature=True path (read_out_head) not exercised (default False).
    return ret


# ----------------------------------------------------------------------------
# Main
# ----------------------------------------------------------------------------

if __name__ == "__main__":
    key = jax.random.PRNGKey(0)
    pkey, skey, tkey = jax.random.split(key, 3)

    img_size = (16, 16, 16)
    params = init_params(pkey, embed_dim=16, reg_head_chan=8)

    source = jax.random.normal(skey, (2, 1) + img_size, jnp.float32)
    target = jax.random.normal(tkey, (2, 1) + img_size, jnp.float32)

    out = rec_vmamba_morph_feat(params, source, target, rec_num=2)
    out = jax.block_until_ready(out)

    assert out['moved_vol'].shape == (2, 1) + img_size
    assert out['preint_flow'].shape == (2, 3) + img_size
    assert out['pos_flow'].shape == (2, 3) + img_size
    assert out['feature_loss'].shape == ()
    assert np.isfinite(np.array(out['feature_loss']))
    print("KERNEL_OK")
</pallas_src>

<mosaic_0001>
module attributes {stable_mosaic.version = 11 : i64} {
  func.func @_mm_cf_kernel(%arg0: i32, %arg1: memref<16x27xbf16, #tpu.memory_space<vmem>>, %arg2: memref<27x512xbf16, #tpu.memory_space<vmem>>, %arg3: memref<16x1xf32, #tpu.memory_space<vmem>>, %arg4: memref<16x1xf32, #tpu.memory_space<vmem>>, %arg5: memref<16x1xf32, #tpu.memory_space<vmem>>, %arg6: memref<16x512xf32, #tpu.memory_space<vmem>>) attributes {dimension_semantics = [#tpu.dimension_semantics<parallel>], iteration_bounds = array<i64: 32>, scalar_prefetch = 0 : i64, scratch_operands = 0 : i64, tpu.core_type = #tpu.core_type<tc>, window_params = [{pipeline_mode = #tpu.pipeline_mode<synchronous>, transform_indices = @transform_0, window_bounds = array<i64: 16, 27>}, {transform_indices = @transform_1, window_bounds = array<i64: 27, 512>}, {pipeline_mode = #tpu.pipeline_mode<synchronous>, transform_indices = @transform_2, window_bounds = array<i64: 16, 1>}, {pipeline_mode = #tpu.pipeline_mode<synchronous>, transform_indices = @transform_3, window_bounds = array<i64: 16, 1>}, {pipeline_mode = #tpu.pipeline_mode<synchronous>, transform_indices = @transform_4, window_bounds = array<i64: 16, 1>}, {transform_indices = @transform_5, window_bounds = array<i64: 16, 512>}]} {
    %c0 = arith.constant 0 : index
    %c0_0 = arith.constant 0 : index
    %0 = vector.load %arg1[%c0, %c0_0] : memref<16x27xbf16, #tpu.memory_space<vmem>>, vector<16x27xbf16>
    %c0_1 = arith.constant 0 : index
    %c0_2 = arith.constant 0 : index
    %1 = vector.load %arg2[%c0_1, %c0_2] : memref<27x512xbf16, #tpu.memory_space<vmem>>, vector<27x512xbf16>
    %cst = arith.constant dense<0.000000e+00> : vector<16x512xf32>
    %2 = tpu.matmul %0, %1, %cst {dimension_numbers = #tpu.dot_dimension_numbers<[1], [0], [0], [1], [0, 0, 1, 1], [], []>} : vector<16x27xbf16>, vector<27x512xbf16>, vector<16x512xf32> -> vector<16x512xf32>
    %c0_3 = arith.constant 0 : index
    %c0_4 = arith.constant 0 : index
    %3 = vector.load %arg3[%c0_3, %c0_4] : memref<16x1xf32, #tpu.memory_space<vmem>>, vector<16x1xf32>
    %4 = vector.broadcast %3 : vector<16x1xf32> to vector<16x512xf32>
    %5 = arith.addf %2, %4 : vector<16x512xf32>
    %cst_5 = arith.constant 0.000000e+00 : f32
    %6 = vector.broadcast %cst_5 : f32 to vector<16x512xf32>
    %7 = arith.cmpf oge, %5, %6 : vector<16x512xf32>
    %cst_6 = arith.constant 2.000000e-01 : f32
    %8 = vector.broadcast %cst_6 : f32 to vector<16x512xf32>
    %9 = arith.mulf %8, %5 : vector<16x512xf32>
    %10 = arith.select %7, %5, %9 : vector<16x512xi1>, vector<16x512xf32>
    %c0_7 = arith.constant 0 : index
    %c0_8 = arith.constant 0 : index
    %11 = vector.load %arg6[%c0_7, %c0_8] : memref<16x512xf32, #tpu.memory_space<vmem>>, vector<16x512xf32>
    tpu.vector_store %arg6[%c0_7, %c0_8], %10 {strides = array<i32>} : memref<16x512xf32, #tpu.memory_space<vmem>>, vector<16x512xf32>,
    return
  }
  func.func @transform_0(%arg0: i32) -> (i32, i32) {
    %c0_i32 = arith.constant 0 : i32
    %c0_i32_0 = arith.constant 0 : i32
    %c0_i32_1 = arith.constant 0 : i32
    return %c0_i32, %c0_i32_0 : i32, i32
  }
  func.func @transform_1(%arg0: i32) -> (i32, i32) {
    %c0_i32 = arith.constant 0 : i32
    %c0_i32_0 = arith.constant 0 : i32
    return %c0_i32, %arg0 : i32, i32
  }
  func.func @transform_2(%arg0: i32) -> (i32, i32) {
    %c0_i32 = arith.constant 0 : i32
    %c0_i32_0 = arith.constant 0 : i32
    %c0_i32_1 = arith.constant 0 : i32
    return %c0_i32, %c0_i32_0 : i32, i32
  }
  func.func @transform_3(%arg0: i32) -> (i32, i32) {
    %c0_i32 = arith.constant 0 : i32
    %c0_i32_0 = arith.constant 0 : i32
    %c0_i32_1 = arith.constant 0 : i32
    return %c0_i32, %c0_i32_0 : i32, i32
  }
  func.func @transform_4(%arg0: i32) -> (i32, i32) {
    %c0_i32 = arith.constant 0 : i32
    %c0_i32_0 = arith.constant 0 : i32
    %c0_i32_1 = arith.constant 0 : i32
    return %c0_i32, %c0_i32_0 : i32, i32
  }
  func.func @transform_5(%arg0: i32) -> (i32, i32) {
    %c0_i32 = arith.constant 0 : i32
    %c0_i32_0 = arith.constant 0 : i32
    return %c0_i32, %arg0 : i32, i32
  }
}

</mosaic_0001>

<bundles_post_ra>
// kernel: tpu_custom_call.1
= control target key start
LH: loop header
LB: loop body
LE: loop exit
PB: predicated region body
PF: predicated region fallthrough
CT: control target
= control target key end

     0   :  { %10 = vsyncpa [#allocation3], 0  ;;  %s932_s0 = inlined_call_operand.vmem [shape: bf16[16,27], index: 0, kind: input, shape index: {}]   ;;  %s933_s1 = inlined_call_operand.hbm [shape: bf16[27,16384], index: 1, kind: input, shape index: {}]   ;;  %s934_s2 = inlined_call_operand.vmem [shape: f32[16,1], index: 2, kind: input, shape index: {}]   ;;  %s935_s3 = inlined_call_operand.vmem [shape: f32[16,1], index: 3, kind: input, shape index: {}]   ;;  %s936_s4 = inlined_call_operand.vmem [shape: f32[16,1], index: 4, kind: input, shape index: {}]   ;;  %s937_s5 = inlined_call_operand.hbm [shape: f32[16,16384], index: 5, kind: output, shape index: {}]  }
   0x1   :  { %12 = vsyncpa [#allocation3 + $0x1], 0 }
   0x2   :  { %13 = vsyncpa [#allocation4], 0 }
   0x3   :  { %15 = vsyncpa [#allocation4 + $0x1], 0  ;;  %s764_s18 = smov 0   ;;  %s766_s19 = smov 0  }
   0x4   :  { %s768_s20 = smov 0   ;;  %s770_s21 = smov 0  }
   0x5 LB: > { %s785_s3 = sadd.s32 4294967295, %s724_s21   ;;  %s508_s4 = sadd.s32 4294967294, %s724_s21   ;;  %s724_s21 = sphi %s770_s21, %s946_s21   ;;  %s720_s20 = sphi %s768_s20, %s945_s20   ;;  %s716_s19 = sphi %s766_s19, %s944_s19   ;;  %s712_s18 = sphi %s764_s18, %s943_s18  }
   0x6   : > { %s789_s22 = sadd.s32 1, %s724_s21   ;;  %s49_s23 = sadd.s32 1, %s720_s20 }
   0x7   : > { %s46_s24 = ssub.s32 %s724_s21, %s789_s22  ;;  %p56_p0 = scmp.ne.s32.totalorder %s720_s20, %s716_s19 }
   0x8   : > { %p47_p1 = scmp.eq.s32.totalorder %s46_s24, 0  ;;  %p57_p2 = scmp.eq.s32.totalorder %s724_s21, 0 }
   0x9   : > { %p62_p3 = scmp.ne.s32.totalorder %s716_s19, %s712_s18  ;;  %p63_p4 = scmp.eq.s32.totalorder %s785_s3, 0 }
   0xa   : > { %s801_s25 = scalar_select %p47_p1, %s720_s20, %s49_s23  }
   0xb   : > { %p803_p5 = por %p57_p2, %p56_p0  ;;  %p807_p6 = por %p63_p4, %p62_p3 }
   0xc   : > { %p149_p7 = scmp.eq.s32.totalorder %s785_s3, 31  ;;  %p155_p8 = scmp.eq.s32.totalorder %s508_s4, 31 }
   0xd   : > { %p585_p9 = scmp.lt.s32.totalorder %s724_s21, 32  ;;  %s187_s30 = sand.u32 1, %s720_s20  }
   0xe   : > { %p813_p10 = por %p149_p7, %p56_p0  ;;  %p817_p11 = por %p155_p8, %p62_p3 }
   0xf   : > { %s562_s6 = sshll.u32 %s724_s21, 4  ;;  %s511_s7 = sshll.u32 %s187_s30, 6 }
  0x10   : > { %s196_s10 = scalar_lea.hbm %s933_s1, %s562_s6  ;;  %s191_s12 = scalar_lea.vmem [#allocation2], %s511_s7 }
  0x11   : > { %s197_s11 = sshll.u32 %s196_s10, 4  ;;  %s199_s13 = sshll.u32 %s191_s12, 4  ;;  %s198_s11 = int_to_ptr.hbm [resolvable:$true] %s197_s11  ;;  %s200_s13 = int_to_ptr.vmem [resolvable:$true] %s199_s13 }
  0x12   : > { %p828_p12 = pnand %p585_p9, %p803_p5  ;;  %p514_p13 = scmp.ge.s32.totalorder %s724_s21, 1 }
  0x13   : > { %s188_s15 = scalar_lea.sflag [#allocation3], %s187_s30  ;;  %s628_s16 = sshra.s32 %s198_s11, 4  ;;  %s629_s16 = int_to_ptr.hbm [resolvable:$true] %s628_s16 }
  0x14   : > { %s630_s17 = scalar_lea.hbm %s629_s16, 64  ;;  %p632_p1 = pneg %p828_p12 }
  0x15   : > { %p631_p0 = scmp.ne.s32.totalorder %s629_s16, %s630_s17  ;;  %s635_s24 = scalar_lea.hbm %s933_s1, 2048 }
  0x16   : > { %p636_p4 = scmp.lt.s32.totalorder %s629_s16, %s933_s1  ;;  %p637_p5 = scmp.lt.s32.totalorder %s635_s24, %s630_s17 }
  0x17   : > { %p633_p2 = pnand %p632_p1, %p631_p0 }
  0x18   : > { %p638_p7 = por %p637_p5, %p636_p4 }
  0x19   : > { %p634_p3 = pneg %p633_p2 }
  0x1b   : > { %p639_p8 = pnand %p638_p7, %p634_p3 }
  0x1d   : > { %642 = shalt.err (!%p639_p8)
}
  0x1e   : > { %s726_s30 = smov 8192   ;;  %s727_s7 = smov 256  }
  0x1f   : > { %s728_s8 = smov 16   ;;  %p207_p9 = scmp.lt.s32.totalorder %s724_s21, 33 }
  0x20   : > { %580 = dma.hbm_to_vmem [thread:$0]  (!%p828_p12), %s198_s11, 1024, %s200_s13, %s188_s15, %s726_s30, %s727_s7, %s728_s8  }
  0x21   : > { %p208_p0 = pnand %p514_p13, %p207_p9 }
  0x22   : > { %s847_s9 = sand.u32 (!%p208_p0), 1, %s716_s19  }
  0x23   : > { %211 = sbr.rel (%p208_p0) target bundleno = 207 (0xcf), region = 40  ;;  %s515_s10 = sshll.u32 (!%p208_p0), %s847_s9, 6 }
  0x24   : > { %s214_s12 = scalar_lea.sflag (!%p208_p0), [#allocation3], %s847_s9  ;;  %s853_s16 = scalar_lea.vmem (!%p208_p0), [#allocation2], %s515_s10 }
  0x28   : > { %703 = dma.done.wait (%p807_p6), %s214_s12, 1024  }
  0x29   : > { %705 = vsyncadd (%p807_p6), %s214_s12, 4294966272  ;;  %vm315_vm0 = vcmask 1044480   ;;  %v729_v0 = vmov 0   ;;  %vm316_vm1 = vcmask 1045504   ;;  %v730_v1 = vmov 65535   ;;  %v258_v29 = vld [vmem:[%s934_s2] sm:$0xff] }
  0x2a   : > { %627 = vset.pattern.permute.xlu0 %v729_v0  ;;  %v317_v2 = vsel %vm315_vm0, 4294967295, %v730_v1  ;;  %v539_v4 = vld [vmem:[%s853_s16 + $0x20] sm:$0xf]  ;;  %v570_v5 = vld [vmem:[%s853_s16 + $0x2c] sm:$0x30]  ;;  %vm311_vm2 = vcmask 220160  }
  0x2b   : > { %v318_v3 = vsel %vm316_vm1, %v317_v2, 0  ;;  %v568_v6 = vld [vmem:[%s853_s16 + $0x24] sm:$0xf]  ;;  %v540_v7 = vor.u32 %v570_v5, %v539_v4  ;;  %v541_v8 = vld [vmem:[%s853_s16 + $0x30] sm:$0x30]  ;;  %262 = vperm.xlu0 %627, %v258_v29   ;;  %v259_v34 = vld [vmem:[%s934_s2 + $0x8] sm:$0xff] }
  0x2c   : > { %v547_v9 = vld [vmem:[%s853_s16 + $0x28] sm:$0xf]  ;;  %v571_v10 = vld [vmem:[%s853_s16 + $0x34] sm:$0x30]  ;;  %v544_v11 = vor.u32 %v568_v6, %v541_v8  ;;  %v569_v13 = vld [vmem:[%s853_s16 + $0x2c] sm:$0xf] }
  0x2d   : > { %v548_v12 = vor.u32 %v571_v10, %v547_v9  ;;  %v549_v14 = vld [vmem:[%s853_s16 + $0x38] sm:$0x30]  ;;  %v523_v15 = vld [vmem:[%s853_s16] sm:$0xf]  ;;  %v320_v16 = vand.u32 %v540_v7, %v318_v3  ;;  %v566_v18 = vld [vmem:[%s853_s16 + $0xc] sm:$0xf0] }
  0x2e   : > { %v552_v17 = vor.u32 %v569_v13, %v549_v14  ;;  %v564_v19 = vld [vmem:[%s853_s16 + $0x4] sm:$0xf]  ;;  %v525_v20 = vld [vmem:[%s853_s16 + $0x10] sm:$0xf0]  ;;  %v323_v21 = vand.u32 %v544_v11, %v318_v3  ;;  %v531_v23 = vld [vmem:[%s853_s16 + $0x8] sm:$0xf]  ;;  %v524_v27 = vor.u32 %v566_v18, %v523_v15 }
  0x2f   : > { %v326_v22 = vand.u32 %v548_v12, %v318_v3  ;;  %v567_v24 = vld [vmem:[%s853_s16 + $0x14] sm:$0xf0]  ;;  %v565_v25 = vld [vmem:[%s853_s16 + $0xc] sm:$0xf]  ;;  %337 = vmatpush.bf16.msra.mxu0 %v320_v16  ;;  %v533_v28 = vld [vmem:[%s853_s16 + $0x18] sm:$0xf0]  ;;  %v528_v30 = vor.u32 %v564_v19, %v525_v20 }
  0x30   : > { %v329_v26 = vand.u32 %v552_v17, %v318_v3  ;;  %351 = vmatpush.bf16.msra.mxu1 %v323_v21  ;;  %v532_v31 = vor.u32 %v567_v24, %v531_v23  ;;  %v536_v32 = vor.u32 %v565_v25, %v533_v28  ;;  %v563_v33 = vld [vmem:[%s932_s0] sm:$0xff]  ;;  %s886_s4 = scalar_lea.vmem [#allocation5], %s515_s10  ;;  %s572_s23 = sshll.u32 %s785_s3, 5 }
  0x31   : > { %365 = vmatpush.bf16.msra.mxu2 %v326_v22  ;;  %s431_s6 = scalar_lea.hbm %s937_s5, %s572_s23  ;;  %s432_s30 = sshll.u32 %s886_s4, 4  ;;  %s899_s30 = int_to_ptr.vmem [resolvable:$true] %s432_s30 }
  0x32   : > { %379 = vmatpush.bf16.msra.mxu3 %v329_v26  ;;  %s434_s3 = sshll.u32 %s431_s6, 4  ;;  %s420_s7 = scalar_lea.sflag [#allocation4], %s847_s9  ;;  %s435_s3 = int_to_ptr.hbm [resolvable:$true] %s434_s3 }
  0x33   : > { %338 = vmatpush.bf16.msra.mxu0 %v524_v27  ;;  %267 = vperm.xlu0 %627, %v259_v34   ;;  %s672_s8 = sshra.s32 %s435_s3, 4  ;;  %s678_s27 = scalar_lea.hbm %s937_s5, 2048  ;;  %s673_s8 = int_to_ptr.hbm [resolvable:$true] %s672_s8 }
  0x34   : > { %352 = vmatpush.bf16.msra.mxu1 %v528_v30  ;;  %s674_s10 = scalar_lea.hbm %s673_s8, 64  ;;  %p679_p1 = scmp.lt.s32.totalorder %s673_s8, %s937_s5 }
  0x35   : > { %366 = vmatpush.bf16.msra.mxu2 %v532_v31  ;;  %p675_p6 = scmp.ne.s32.totalorder %s673_s8, %s674_s10  ;;  %p680_p2 = scmp.lt.s32.totalorder %s678_s27, %s674_s10 }
  0x36   : > { %380 = vmatpush.bf16.msra.mxu3 %v536_v32  ;;  %553 = vmatmul.msk.bf16.vlgmr.msra.gmra.mxu0 %vm311_vm2, %v563_v33 }
  0x37   : > { %554 = vmatmul.msk.bf16.vlgmr.msra.gmra.mxu1 %vm311_vm2, %v563_v33  ;;  %p676_p12 = pnand %p675_p6, %p813_p10  ;;  %p681_p3 = por %p680_p2, %p679_p1 }
  0x38   : > { %555 = vmatmul.msk.bf16.vlgmr.msra.gmra.mxu2 %vm311_vm2, %v563_v33 }
  0x39   : > { %556 = vmatmul.msk.bf16.vlgmr.msra.gmra.mxu3 %vm311_vm2, %v563_v33  ;;  %p677_p13 = pneg %p676_p12 }
  0x3b   : > { %p682_p4 = pnand %p681_p3, %p677_p13 }
  0x9d   : > { %v263_v35 = vpop.permute.xlu0 %262 }
  0xa5   : > { %v268_v44 = vpop.permute.xlu0 %267 }
  0xb3   : > { %v340_v36 = vpop.f32.mrf.mxu0 }
  0xb4   : > { %v341_v37 = vadd.f32 %v340_v36, %v263_v35  ;;  %v354_v38 = vpop.f32.mrf.mxu1 }
  0xb5   : > { %v355_v39 = vadd.f32 %v354_v38, %v263_v35 }
  0xb6   : > { %vm387_vm3 = vcmp.ge.f32.partialorder %v341_v37, 0.0  ;;  %v395_v40 = vmul.f32 0.2, %v341_v37 }
  0xb7   : > { %vm388_vm4 = vcmp.ge.f32.partialorder %v355_v39, 0.0  ;;  %v396_v41 = vmul.f32 0.2, %v355_v39 }
  0xb8   : > { %v403_v42 = vsel %vm387_vm3, %v341_v37, %v395_v40 }
  0xb9   : > { %411 = vst [vmem:[%s886_s4] sm:$0xff] %v403_v42  ;;  %v404_v43 = vsel %vm388_vm4, %v355_v39, %v396_v41 }
  0xba   : > { %412 = vst [vmem:[%s886_s4 + $0x8] sm:$0xff] %v404_v43 }
  0xbb   : > { %v368_v45 = vpop.f32.mrf.mxu2  ;;  %v342_v48 = vpop.f32.mrf.mxu0 }
  0xbc   : > { %v369_v46 = vadd.f32 %v368_v45, %v263_v35  ;;  %v382_v47 = vpop.f32.mrf.mxu3  ;;  %v343_v50 = vadd.f32 %v342_v48, %v268_v44  ;;  %v356_v51 = vpop.f32.mrf.mxu1 }
  0xbd   : > { %v383_v49 = vadd.f32 %v382_v47, %v263_v35  ;;  %v357_v53 = vadd.f32 %v356_v51, %v268_v44 }
  0xbe   : > { %vm389_vm5 = vcmp.ge.f32.partialorder %v369_v46, 0.0  ;;  %v397_v52 = vmul.f32 0.2, %v369_v46  ;;  %vm391_vm7 = vcmp.ge.f32.partialorder %v343_v50, 0.0  ;;  %v399_v55 = vmul.f32 0.2, %v343_v50 }
  0xbf   : > { %vm390_vm6 = vcmp.ge.f32.partialorder %v383_v49, 0.0  ;;  %v398_v54 = vmul.f32 0.2, %v383_v49  ;;  %vm392_vm8 = vcmp.ge.f32.partialorder %v357_v53, 0.0  ;;  %v400_v57 = vmul.f32 0.2, %v357_v53 }
  0xc0   : > { %v405_v56 = vsel %vm389_vm5, %v369_v46, %v397_v52  ;;  %v407_v59 = vsel %vm391_vm7, %v343_v50, %v399_v55 }
  0xc1   : > { %413 = vst [vmem:[%s886_s4 + $0x10] sm:$0xff] %v405_v56  ;;  %v406_v58 = vsel %vm390_vm6, %v383_v49, %v398_v54  ;;  %v408_v60 = vsel %vm392_vm8, %v357_v53, %v400_v57 }
  0xc2   : > { %414 = vst [vmem:[%s886_s4 + $0x18] sm:$0xff] %v406_v58 }
  0xc3   : > { %415 = vst [vmem:[%s886_s4 + $0x20] sm:$0xff] %v407_v59  ;;  %v370_v61 = vpop.f32.mrf.mxu2 }
  0xc4   : > { %416 = vst [vmem:[%s886_s4 + $0x28] sm:$0xff] %v408_v60  ;;  %v371_v62 = vadd.f32 %v370_v61, %v268_v44  ;;  %v384_v63 = vpop.f32.mrf.mxu3 }
  0xc5   : > { %v385_v0 = vadd.f32 %v384_v63, %v268_v44 }
  0xc6   : > { %vm393_vm9 = vcmp.ge.f32.partialorder %v371_v62, 0.0  ;;  %v401_v1 = vmul.f32 0.2, %v371_v62 }
  0xc7   : > { %vm394_vm10 = vcmp.ge.f32.partialorder %v385_v0, 0.0  ;;  %v402_v2 = vmul.f32 0.2, %v385_v0 }
  0xc8   : > { %v409_v3 = vsel %vm393_vm9, %v371_v62, %v401_v1 }
  0xc9   : > { %417 = vst [vmem:[%s886_s4 + $0x30] sm:$0xff] %v409_v3  ;;  %v410_v4 = vsel %vm394_vm10, %v385_v0, %v402_v2 }
  0xca   : > { %418 = vst [vmem:[%s886_s4 + $0x38] sm:$0xff] %v410_v4 }
  0xcb   : > { %685 = shalt.err (!%p682_p4)
}
  0xcc   : > { %s731_s9 = smov 512   ;;  %s732_s14 = smov 16384  }
  0xcd   : > { %s733_s15 = smov 32  }
  0xce   : > { %575 = dma.vmem_to_hbm [thread:$0]  (%p813_p10), %s899_s30, 1024, %s435_s3, %s420_s7, %s731_s9, %s732_s14, %s733_s15  }
  0xcf PF: > { %p586_p5 = scmp.ge.s32.totalorder %s724_s21, 2  ;;  %s449_s17 = sand.u32 1, %s712_s18  }
  0xd0   : > { %s450_s4 = scalar_lea.sflag [#allocation4], %s449_s17 }
  0xd1   : > { %p582_p7 = pnand %p586_p5, %p817_p11 }
  0xd3   : > { %p583_p8 = pneg %p582_p7 }
  0xd5   : > { %707 = dma.done.wait (%p583_p8), %s450_s4, 1024  }
  0xd6   : > { %709 = vsyncadd (%p583_p8), %s450_s4, 4294966272  ;;  %p18_p9 = scmp.ge.s32.totalorder %s789_s22, 34   ;;  %s943_s18 = smov %s716_s19 }
  0xd7   : > { %s944_s19 = smov %s720_s20  ;;  %s945_s20 = smov %s801_s25 }
  0xd8   : > { %s946_s21 = smov %s789_s22  ;;  %20 = sbr.rel (!%p18_p9) target bundleno = 5 (0x5), region = 85 }
  0xdd   :  { %456 = vsyncpa [#allocation3], 1 }
  0xde   :  { %458 = vsyncpa [#allocation3 + $0x1], 1 }
  0xdf   :  { %459 = vsyncpa [#allocation4], 1 }
  0xe0   :  { %461 = vsyncpa [#allocation4 + $0x1], 1 }

</bundles_post_ra>
